<compile_context>
chip_gen: v7x
topology: tpu7x:2x2x1
jax: 0.10.0
libtpu: 0.0.40
codegen_flags: <defaults>
</compile_context>

<pallas_src>
import functools

import jax
import jax.numpy as jnp
from jax import lax
from jax.experimental import pallas as pl
from jax.experimental.pallas import tpu as pltpu


def _combined_loss_kernel(x_ref, t_ref, tp_ref, psum_ref, ohsum_ref, cf_ref,
                          *, hw, n_classes, tile_hw, tiles_per_part,
                          ce_w, fo_w, gamma):
    part = pl.program_id(0)
    n = pl.program_id(1)
    j = pl.program_id(2)

    # First inner step of this partition: zero the partition's output blocks.
    @pl.when((n == 0) & (j == 0))
    def _():
        tp_ref[...] = jnp.zeros_like(tp_ref)
        psum_ref[...] = jnp.zeros_like(psum_ref)
        ohsum_ref[...] = jnp.zeros_like(ohsum_ref)
        cf_ref[...] = jnp.zeros_like(cf_ref)

    x = x_ref[...].astype(jnp.float32)        # (C, T)
    t = t_ref[...]                            # (1, T) int32

    # Global pixel index per lane, using the UNCLAMPED tile index so ragged
    # edge tiles and duplicate (clamped) tiles are fully masked out.
    tile_idx = part * tiles_per_part + j
    pix = lax.broadcasted_iota(jnp.int32, (1, tile_hw), 1) + tile_idx * tile_hw
    valid = pix < hw                          # (1, T) bool
    validf = valid.astype(jnp.float32)

    # Select-before-exp: garbage VMEM columns in ragged tiles must not reach
    # exp/log (NaN/Inf would poison the lane reductions).
    x = jnp.where(valid, x, 0.0)

    # One-hot via a (1, T) masked target (avoids a (C, T) logical-and).
    t_m = jnp.where(valid, t, -1)
    cls = lax.broadcasted_iota(jnp.int32, (n_classes, tile_hw), 0)
    onehot = (cls == t_m).astype(jnp.float32)                    # (C, T)

    # Softmax pieces over the class (sublane) axis; no full logp materialized.
    m = jnp.max(x, axis=0, keepdims=True)                        # (1, T)
    z = x - m
    ez = jnp.exp(z)
    denom = jnp.sum(ez, axis=0, keepdims=True)                   # (1, T), >= 1
    inv = validf * pl.reciprocal(denom)                          # 0 on invalid lanes
    p_m = ez * inv                                               # masked softmax (C, T)
    poh = p_m * onehot                                           # (C, T)

    # CE = log(denom) - z[target]; exactly 0 on invalid lanes.
    ce = validf * jnp.log(denom) - jnp.sum(z * onehot, axis=0, keepdims=True)

    # Focal modulation; p_t == exp(-ce) on valid lanes (reuses poh, no extra exp).
    p_t = jnp.sum(poh, axis=0, keepdims=True)                    # (1, T)
    base = jnp.maximum(1.0 - p_t, 0.0)                           # clamp (pow safety)
    if float(gamma).is_integer():
        mod = base ** int(gamma)
    else:
        mod = base ** gamma
    focal = mod * ce                                             # 0 on invalid lanes

    # Fused, weighted CE+focal partial: one cross-lane reduce per tile into a
    # scalar-sized output block (no (1, tile) accumulators).
    cf_ref[...] += jnp.sum(ce_w * ce + fo_w * focal, keepdims=True)

    # Tversky statistics: tp + column sums of masked p and onehot (fp/fn are
    # derived at finalize).
    tp_ref[...] += jnp.sum(poh, axis=1, keepdims=True)            # (C, 1)
    psum_ref[...] += jnp.sum(p_m, axis=1, keepdims=True)          # (C, 1)
    ohsum_ref[...] += jnp.sum(onehot, axis=1, keepdims=True)      # (C, 1)


def combined_loss(logits, targets, *, num_classes,
                  ce_weight=0.3, tversky_weight=0.7, focal_weight=0.3,
                  tversky_beta=0.7, smooth=1e-5, gamma=2.0,
                  num_partitions=2, vmem_budget_bytes=24 * 1024 * 1024,
                  max_tile_hw=65536):
    """logits: (N, C, H, W) float (f32 or bf16); targets: (N, H, W) int class ids."""
    N, C, H, W = logits.shape
    assert C == num_classes
    HW = H * W

    # Free reshapes only: no transpose, no padding, no dtype upcast in HBM.
    x = logits.reshape(N, C, HW)
    t = targets.reshape(N, 1, HW).astype(jnp.int32)

    # Tile size derived from a VMEM budget: double-buffered input blocks plus
    # an estimate of the in-kernel f32 (C, T)/(1, T) temporaries.
    bytes_logit = jnp.dtype(logits.dtype).itemsize
    per_pixel_inputs = 2 * (C * bytes_logit + 4)       # logits + int32 targets, x2 bufs
    per_pixel_temps = 4 * (6 * C + 8)                  # live f32 temporaries (estimate)
    per_pixel = per_pixel_inputs + per_pixel_temps
    tile_cap = max(128, min(max_tile_hw,
                            (vmem_budget_bytes // per_pixel) // 128 * 128))
    tile = HW if HW <= tile_cap else tile_cap          # interior tiles lane-aligned

    nt = -(-HW // tile)                                # tiles covering one image
    P = max(1, min(num_partitions, nt))                # partition (megacore) axis
    tpp = -(-nt // P)                                  # tiles per partition

    kernel = functools.partial(
        _combined_loss_kernel,
        hw=HW, n_classes=C, tile_hw=tile, tiles_per_part=tpp,
        ce_w=ce_weight, fo_w=focal_weight, gamma=gamma)

    # Clamp the pixel-block index so a partition's trailing (fully masked)
    # duplicate tile never indexes past the array; the kernel masks it to zero.
    def in_map(p, n, j):
        return (n, 0, jnp.minimum(p * tpp + j, nt - 1))

    def out_map(p, n, j):
        return (p, 0, 0)

    vmem_limit = int(min(56 * 1024 * 1024,
                         max(32 * 1024 * 1024, per_pixel * tile + (8 << 20))))

    tp_p, psum_p, ohsum_p, cf_p = pl.pallas_call(
        kernel,
        out_shape=(
            jax.ShapeDtypeStruct((P, C, 1), jnp.float32),   # tp per partition
            jax.ShapeDtypeStruct((P, C, 1), jnp.float32),   # sum p per partition
            jax.ShapeDtypeStruct((P, C, 1), jnp.float32),   # sum onehot per partition
            jax.ShapeDtypeStruct((P, 1, 1), jnp.float32),   # ce_w*ce + fo_w*focal sums
        ),
        grid_spec=pltpu.PrefetchScalarGridSpec(
            num_scalar_prefetch=0,
            grid=(P, N, tpp),
            in_specs=[
                pl.BlockSpec((None, C, tile), in_map),
                pl.BlockSpec((None, 1, tile), in_map),
            ],
            out_specs=[
                pl.BlockSpec((None, C, 1), out_map),
                pl.BlockSpec((None, C, 1), out_map),
                pl.BlockSpec((None, C, 1), out_map),
                pl.BlockSpec((None, 1, 1), out_map),
            ],
        ),
        compiler_params=pltpu.CompilerParams(
            dimension_semantics=("parallel", "arbitrary", "arbitrary"),
            vmem_limit_bytes=vmem_limit),
    )(x, t)

    # Trivial finalize in the wrapper (makes the partition axis safe to run on
    # separate TensorCores on v7x; negligible cost).
    tp = jnp.sum(tp_p, axis=0)[:, 0]         # (C,)
    psum = jnp.sum(psum_p, axis=0)[:, 0]
    ohsum = jnp.sum(ohsum_p, axis=0)[:, 0]
    fp = psum - tp
    fn = ohsum - tp
    alpha = 1.0 - tversky_beta
    tversky = (tp + smooth) / (tp + alpha * fp + tversky_beta * fn + smooth)
    tv_loss = jnp.mean(1.0 - tversky)
    ce_focal = jnp.sum(cf_p) / (N * HW)      # already weighted by ce_w / focal_w
    return ce_focal + tversky_weight * tv_loss


def _reference_combined_loss(logits, targets, *, num_classes,
                             ce_weight=0.3, tversky_weight=0.7, focal_weight=0.3,
                             tversky_beta=0.7, smooth=1e-5, gamma=2.0):
    """Pure-JAX reference matching the PyTorch module semantics."""
    logits = logits.astype(jnp.float32)
    logp = jax.nn.log_softmax(logits, axis=1)
    p = jax.nn.softmax(logits, axis=1)
    onehot = jax.nn.one_hot(targets, num_classes, axis=1, dtype=jnp.float32)
    ce = -jnp.sum(onehot * logp, axis=1)            # (N, H, W)
    ce_mean = jnp.mean(ce)
    p_t = jnp.exp(-ce)
    focal_mean = jnp.mean(((1.0 - p_t) ** gamma) * ce)
    alpha = 1.0 - tversky_beta
    tp = jnp.sum(p * onehot, axis=(0, 2, 3))
    fp = jnp.sum(p * (1.0 - onehot), axis=(0, 2, 3))
    fn = jnp.sum((1.0 - p) * onehot, axis=(0, 2, 3))
    tversky = (tp + smooth) / (tp + alpha * fp + tversky_beta * fn + smooth)
    tv_loss = jnp.mean(1.0 - tversky)
    return ce_weight * ce_mean + tversky_weight * tv_loss + focal_weight * focal_mean


if __name__ == "__main__":
    key = jax.random.PRNGKey(0)

    # Main small-shape test: batch=2, num_classes=4, spatial 16x16.
    N, C, H, W = 2, 4, 16, 16
    k1, k2, k3, k4 = jax.random.split(key, 4)
    logits = jax.random.normal(k1, (N, C, H, W), dtype=jnp.float32)
    targets = jax.random.randint(k2, (N, H, W), 0, C, dtype=jnp.int32)

    loss = combined_loss(logits, targets, num_classes=C)
    loss = jax.block_until_ready(loss)
    ref = _reference_combined_loss(logits, targets, num_classes=C)
    ref = jax.block_until_ready(ref)
    assert jnp.allclose(loss, ref, atol=1e-5, rtol=1e-5), (loss, ref)

    # Secondary test exercising ragged edge tiles, tile clamping and the
    # 2-partition (megacore) path: HW=300 with a forced 128-pixel tile.
    N2, C2, H2, W2 = 1, 4, 10, 30
    logits2 = jax.random.normal(k3, (N2, C2, H2, W2), dtype=jnp.float32)
    targets2 = jax.random.randint(k4, (N2, H2, W2), 0, C2, dtype=jnp.int32)
    loss2 = combined_loss(logits2, targets2, num_classes=C2, max_tile_hw=128)
    loss2 = jax.block_until_ready(loss2)
    ref2 = _reference_combined_loss(logits2, targets2, num_classes=C2)
    ref2 = jax.block_until_ready(ref2)
    assert jnp.allclose(loss2, ref2, atol=1e-5, rtol=1e-5), (loss2, ref2)

    print("KERNEL_OK")
</pallas_src>

<mosaic_0001>
module attributes {stable_mosaic.version = 11 : i64} {
  func.func @_combined_loss_kernel(%arg0: i32, %arg1: i32, %arg2: i32, %arg3: memref<1x4x256xf32, #tpu.memory_space<vmem>>, %arg4: memref<1x1x256xi32, #tpu.memory_space<vmem>>, %arg5: memref<1x4x1xf32, #tpu.memory_space<vmem>>, %arg6: memref<1x4x1xf32, #tpu.memory_space<vmem>>, %arg7: memref<1x4x1xf32, #tpu.memory_space<vmem>>, %arg8: memref<1x1x1xf32, #tpu.memory_space<vmem>>) attributes {dimension_semantics = [#tpu.dimension_semantics<parallel>, #tpu.dimension_semantics<arbitrary>, #tpu.dimension_semantics<arbitrary>], iteration_bounds = array<i64: 1, 2, 1>, scalar_prefetch = 0 : i64, scratch_operands = 0 : i64, tpu.core_type = #tpu.core_type<tc>, window_params = [{transform_indices = @transform_0, window_bounds = array<i64: 1, 4, 256>}, {transform_indices = @transform_1, window_bounds = array<i64: 1, 1, 256>}, {transform_indices = @transform_2, window_bounds = array<i64: 1, 4, 1>}, {transform_indices = @transform_3, window_bounds = array<i64: 1, 4, 1>}, {transform_indices = @transform_4, window_bounds = array<i64: 1, 4, 1>}, {transform_indices = @transform_5, window_bounds = array<i64: 1, 1, 1>}]} {
    %c0_i32 = arith.constant 0 : i32
    %0 = arith.cmpi eq, %arg1, %c0_i32 : i32
    %c0_i32_0 = arith.constant 0 : i32
    %1 = arith.cmpi eq, %arg2, %c0_i32_0 : i32
    %2 = arith.andi %0, %1 : i1
    %3 = arith.extui %2 : i1 to i32
    %c0_i32_1 = arith.constant 0 : i32
    %4 = arith.cmpi ne, %3, %c0_i32_1 : i32
    scf.if %4 {
      %cst_44 = arith.constant 0.000000e+00 : f32
      %96 = vector.broadcast %cst_44 : f32 to vector<4x1xf32>
      %c0_45 = arith.constant 0 : index
      %c0_46 = arith.constant 0 : index
      %c0_47 = arith.constant 0 : index
      %97 = vector.load %arg5[%c0_45, %c0_46, %c0_47] : memref<1x4x1xf32, #tpu.memory_space<vmem>>, vector<1x4x1xf32>
      %98 = vector.shape_cast %97 : vector<1x4x1xf32> to vector<4x1xf32>
      %99 = vector.shape_cast %96 : vector<4x1xf32> to vector<1x4x1xf32>
      tpu.vector_store %arg5[%c0_45, %c0_46, %c0_47], %99 {strides = array<i32>} : memref<1x4x1xf32, #tpu.memory_space<vmem>>, vector<1x4x1xf32>,
      %cst_48 = arith.constant 0.000000e+00 : f32
      %100 = vector.broadcast %cst_48 : f32 to vector<4x1xf32>
      %c0_49 = arith.constant 0 : index
      %c0_50 = arith.constant 0 : index
      %c0_51 = arith.constant 0 : index
      %101 = vector.load %arg6[%c0_49, %c0_50, %c0_51] : memref<1x4x1xf32, #tpu.memory_space<vmem>>, vector<1x4x1xf32>
      %102 = vector.shape_cast %101 : vector<1x4x1xf32> to vector<4x1xf32>
      %103 = vector.shape_cast %100 : vector<4x1xf32> to vector<1x4x1xf32>
      tpu.vector_store %arg6[%c0_49, %c0_50, %c0_51], %103 {strides = array<i32>} : memref<1x4x1xf32, #tpu.memory_space<vmem>>, vector<1x4x1xf32>,
      %cst_52 = arith.constant 0.000000e+00 : f32
      %104 = vector.broadcast %cst_52 : f32 to vector<4x1xf32>
      %c0_53 = arith.constant 0 : index
      %c0_54 = arith.constant 0 : index
      %c0_55 = arith.constant 0 : index
      %105 = vector.load %arg7[%c0_53, %c0_54, %c0_55] : memref<1x4x1xf32, #tpu.memory_space<vmem>>, vector<1x4x1xf32>
      %106 = vector.shape_cast %105 : vector<1x4x1xf32> to vector<4x1xf32>
      %107 = vector.shape_cast %104 : vector<4x1xf32> to vector<1x4x1xf32>
      tpu.vector_store %arg7[%c0_53, %c0_54, %c0_55], %107 {strides = array<i32>} : memref<1x4x1xf32, #tpu.memory_space<vmem>>, vector<1x4x1xf32>,
      %cst_56 = arith.constant 0.000000e+00 : f32
      %108 = vector.broadcast %cst_56 : f32 to vector<1x1xf32>
      %c0_57 = arith.constant 0 : index
      %c0_58 = arith.constant 0 : index
      %c0_59 = arith.constant 0 : index
      %109 = vector.load %arg8[%c0_57, %c0_58, %c0_59] : memref<1x1x1xf32, #tpu.memory_space<vmem>>, vector<1x1x1xf32>
      %110 = vector.shape_cast %109 : vector<1x1x1xf32> to vector<1x1xf32>
      %111 = vector.shape_cast %108 : vector<1x1xf32> to vector<1x1x1xf32>
      tpu.vector_store %arg8[%c0_57, %c0_58, %c0_59], %111 {strides = array<i32>} : memref<1x1x1xf32, #tpu.memory_space<vmem>>, vector<1x1x1xf32>,
    } else {
    }
    %c0 = arith.constant 0 : index
    %c0_2 = arith.constant 0 : index
    %c0_3 = arith.constant 0 : index
    %5 = vector.load %arg3[%c0, %c0_2, %c0_3] : memref<1x4x256xf32, #tpu.memory_space<vmem>>, vector<1x4x256xf32>
    %6 = vector.shape_cast %5 : vector<1x4x256xf32> to vector<4x256xf32>
    %c0_4 = arith.constant 0 : index
    %c0_5 = arith.constant 0 : index
    %c0_6 = arith.constant 0 : index
    %7 = vector.load %arg4[%c0_4, %c0_5, %c0_6] : memref<1x1x256xi32, #tpu.memory_space<vmem>>, vector<1x1x256xi32>
    %8 = vector.shape_cast %7 : vector<1x1x256xi32> to vector<1x256xi32>
    %c1_i32 = arith.constant 1 : i32
    %9 = arith.muli %arg0, %c1_i32 : i32
    %10 = arith.addi %9, %arg2 : i32
    %11 = tpu.iota {dimensions = array<i32: 1>} : vector<1x256xi32>
    %c256_i32 = arith.constant 256 : i32
    %12 = arith.muli %10, %c256_i32 : i32
    %13 = vector.broadcast %12 : i32 to vector<1x256xi32>
    %14 = arith.addi %11, %13 : vector<1x256xi32>
    %c256_i32_7 = arith.constant 256 : i32
    %15 = vector.broadcast %c256_i32_7 : i32 to vector<1x256xi32>
    %16 = arith.cmpi slt, %14, %15 : vector<1x256xi32>
    %17 = arith.extui %16 : vector<1x256xi1> to vector<1x256xi32>
    %18 = arith.sitofp %17 : vector<1x256xi32> to vector<1x256xf32>
    %cst = arith.constant 0.000000e+00 : f32
    %19 = vector.shape_cast %16 : vector<1x256xi1> to vector<1x256xi1>
    %20 = vector.broadcast %19 : vector<1x256xi1> to vector<4x256xi1>
    %21 = vector.broadcast %cst : f32 to vector<4x256xf32>
    %22 = arith.select %20, %6, %21 : vector<4x256xi1>, vector<4x256xf32>
    %c-1_i32 = arith.constant -1 : i32
    %23 = vector.broadcast %c-1_i32 : i32 to vector<1x256xi32>
    %24 = arith.select %16, %8, %23 : vector<1x256xi1>, vector<1x256xi32>
    %25 = tpu.iota {dimensions = array<i32: 0>} : vector<4x256xi32>
    %26 = vector.broadcast %24 : vector<1x256xi32> to vector<4x256xi32>
    %27 = arith.cmpi eq, %25, %26 : vector<4x256xi32>
    %28 = arith.extui %27 : vector<4x256xi1> to vector<4x256xi32>
    %29 = arith.sitofp %28 : vector<4x256xi32> to vector<4x256xf32>
    %cst_8 = arith.constant dense<0xFF800000> : vector<256xf32>
    %30 = vector.multi_reduction <maximumf>, %22, %cst_8 [0] : vector<4x256xf32> to vector<256xf32>
    %31 = vector.shape_cast %30 : vector<256xf32> to vector<1x256xf32>
    %32 = vector.broadcast %31 : vector<1x256xf32> to vector<4x256xf32>
    %33 = arith.subf %22, %32 : vector<4x256xf32>
    %34 = math.exp %33 : vector<4x256xf32>
    %cst_9 = arith.constant dense<0.000000e+00> : vector<256xf32>
    %35 = vector.multi_reduction <add>, %34, %cst_9 [0] : vector<4x256xf32> to vector<256xf32>
    %36 = vector.shape_cast %35 : vector<256xf32> to vector<1x256xf32>
    %37 = tpu.reciprocal %36 : vector<1x256xf32> -> vector<1x256xf32>
    %38 = arith.mulf %18, %37 : vector<1x256xf32>
    %39 = vector.broadcast %38 : vector<1x256xf32> to vector<4x256xf32>
    %40 = arith.mulf %34, %39 : vector<4x256xf32>
    %41 = arith.mulf %40, %29 : vector<4x256xf32>
    %42 = math.log %36 : vector<1x256xf32>
    %43 = arith.mulf %18, %42 : vector<1x256xf32>
    %44 = arith.mulf %33, %29 : vector<4x256xf32>
    %cst_10 = arith.constant dense<0.000000e+00> : vector<256xf32>
    %45 = vector.multi_reduction <add>, %44, %cst_10 [0] : vector<4x256xf32> to vector<256xf32>
    %46 = vector.shape_cast %45 : vector<256xf32> to vector<1x256xf32>
    %47 = arith.subf %43, %46 : vector<1x256xf32>
    %cst_11 = arith.constant dense<0.000000e+00> : vector<256xf32>
    %48 = vector.multi_reduction <add>, %41, %cst_11 [0] : vector<4x256xf32> to vector<256xf32>
    %49 = vector.shape_cast %48 : vector<256xf32> to vector<1x256xf32>
    %cst_12 = arith.constant 1.000000e+00 : f32
    %50 = vector.broadcast %cst_12 : f32 to vector<1x256xf32>
    %51 = arith.subf %50, %49 : vector<1x256xf32>
    %cst_13 = arith.constant 0.000000e+00 : f32
    %52 = vector.broadcast %cst_13 : f32 to vector<1x256xf32>
    %53 = arith.maximumf %51, %52 : vector<1x256xf32>
    %54 = arith.mulf %53, %53 : vector<1x256xf32>
    %55 = arith.mulf %54, %47 : vector<1x256xf32>
    %c0_14 = arith.constant 0 : index
    %c0_15 = arith.constant 0 : index
    %c0_16 = arith.constant 0 : index
    %56 = vector.load %arg8[%c0_14, %c0_15, %c0_16] : memref<1x1x1xf32, #tpu.memory_space<vmem>>, vector<1x1x1xf32>
    %57 = vector.shape_cast %56 : vector<1x1x1xf32> to vector<1x1xf32>
    %cst_17 = arith.constant 3.000000e-01 : f32
    %58 = vector.broadcast %cst_17 : f32 to vector<1x256xf32>
    %59 = arith.mulf %58, %47 : vector<1x256xf32>
    %cst_18 = arith.constant 3.000000e-01 : f32
    %60 = vector.broadcast %cst_18 : f32 to vector<1x256xf32>
    %61 = arith.mulf %60, %55 : vector<1x256xf32>
    %62 = arith.addf %59, %61 : vector<1x256xf32>
    %63 = vector.shape_cast %62 : vector<1x256xf32> to vector<1x1x256xf32>
    %cst_19 = arith.constant dense<0.000000e+00> : vector<1xf32>
    %64 = vector.multi_reduction <add>, %63, %cst_19 [1, 2] : vector<1x1x256xf32> to vector<1xf32>
    %65 = vector.shape_cast %64 : vector<1xf32> to vector<1x1x1xf32>
    %66 = vector.extract %65[0, 0, 0] : f32 from vector<1x1x1xf32>
    %67 = vector.broadcast %66 : f32 to vector<1x1xf32>
    %68 = arith.addf %57, %67 : vector<1x1xf32>
    %c0_20 = arith.constant 0 : index
    %c0_21 = arith.constant 0 : index
    %c0_22 = arith.constant 0 : index
    %69 = vector.load %arg8[%c0_20, %c0_21, %c0_22] : memref<1x1x1xf32, #tpu.memory_space<vmem>>, vector<1x1x1xf32>
    %70 = vector.shape_cast %69 : vector<1x1x1xf32> to vector<1x1xf32>
    %71 = vector.shape_cast %68 : vector<1x1xf32> to vector<1x1x1xf32>
    tpu.vector_store %arg8[%c0_20, %c0_21, %c0_22], %71 {strides = array<i32>} : memref<1x1x1xf32, #tpu.memory_space<vmem>>, vector<1x1x1xf32>,
    %c0_23 = arith.constant 0 : index
    %c0_24 = arith.constant 0 : index
    %c0_25 = arith.constant 0 : index
    %72 = vector.load %arg5[%c0_23, %c0_24, %c0_25] : memref<1x4x1xf32, #tpu.memory_space<vmem>>, vector<1x4x1xf32>
    %73 = vector.shape_cast %72 : vector<1x4x1xf32> to vector<4x1xf32>
    %cst_26 = arith.constant dense<0.000000e+00> : vector<4xf32>
    %74 = vector.multi_reduction <add>, %41, %cst_26 [1] : vector<4x256xf32> to vector<4xf32>
    %75 = vector.shape_cast %74 : vector<4xf32> to vector<4x1xf32>
    %76 = arith.addf %73, %75 : vector<4x1xf32>
    %c0_27 = arith.constant 0 : index
    %c0_28 = arith.constant 0 : index
    %c0_29 = arith.constant 0 : index
    %77 = vector.load %arg5[%c0_27, %c0_28, %c0_29] : memref<1x4x1xf32, #tpu.memory_space<vmem>>, vector<1x4x1xf32>
    %78 = vector.shape_cast %77 : vector<1x4x1xf32> to vector<4x1xf32>
    %79 = vector.shape_cast %76 : vector<4x1xf32> to vector<1x4x1xf32>
    tpu.vector_store %arg5[%c0_27, %c0_28, %c0_29], %79 {strides = array<i32>} : memref<1x4x1xf32, #tpu.memory_space<vmem>>, vector<1x4x1xf32>,
    %c0_30 = arith.constant 0 : index
    %c0_31 = arith.constant 0 : index
    %c0_32 = arith.constant 0 : index
    %80 = vector.load %arg6[%c0_30, %c0_31, %c0_32] : memref<1x4x1xf32, #tpu.memory_space<vmem>>, vector<1x4x1xf32>
    %81 = vector.shape_cast %80 : vector<1x4x1xf32> to vector<4x1xf32>
    %cst_33 = arith.constant dense<0.000000e+00> : vector<4xf32>
    %82 = vector.multi_reduction <add>, %40, %cst_33 [1] : vector<4x256xf32> to vector<4xf32>
    %83 = vector.shape_cast %82 : vector<4xf32> to vector<4x1xf32>
    %84 = arith.addf %81, %83 : vector<4x1xf32>
    %c0_34 = arith.constant 0 : index
    %c0_35 = arith.constant 0 : index
    %c0_36 = arith.constant 0 : index
    %85 = vector.load %arg6[%c0_34, %c0_35, %c0_36] : memref<1x4x1xf32, #tpu.memory_space<vmem>>, vector<1x4x1xf32>
    %86 = vector.shape_cast %85 : vector<1x4x1xf32> to vector<4x1xf32>
    %87 = vector.shape_cast %84 : vector<4x1xf32> to vector<1x4x1xf32>
    tpu.vector_store %arg6[%c0_34, %c0_35, %c0_36], %87 {strides = array<i32>} : memref<1x4x1xf32, #tpu.memory_space<vmem>>, vector<1x4x1xf32>,
    %c0_37 = arith.constant 0 : index
    %c0_38 = arith.constant 0 : index
    %c0_39 = arith.constant 0 : index
    %88 = vector.load %arg7[%c0_37, %c0_38, %c0_39] : memref<1x4x1xf32, #tpu.memory_space<vmem>>, vector<1x4x1xf32>
    %89 = vector.shape_cast %88 : vector<1x4x1xf32> to vector<4x1xf32>
    %cst_40 = arith.constant dense<0.000000e+00> : vector<4xf32>
    %90 = vector.multi_reduction <add>, %29, %cst_40 [1] : vector<4x256xf32> to vector<4xf32>
    %91 = vector.shape_cast %90 : vector<4xf32> to vector<4x1xf32>
    %92 = arith.addf %89, %91 : vector<4x1xf32>
    %c0_41 = arith.constant 0 : index
    %c0_42 = arith.constant 0 : index
    %c0_43 = arith.constant 0 : index
    %93 = vector.load %arg7[%c0_41, %c0_42, %c0_43] : memref<1x4x1xf32, #tpu.memory_space<vmem>>, vector<1x4x1xf32>
    %94 = vector.shape_cast %93 : vector<1x4x1xf32> to vector<4x1xf32>
    %95 = vector.shape_cast %92 : vector<4x1xf32> to vector<1x4x1xf32>
    tpu.vector_store %arg7[%c0_41, %c0_42, %c0_43], %95 {strides = array<i32>} : memref<1x4x1xf32, #tpu.memory_space<vmem>>, vector<1x4x1xf32>,
    return
  }
  func.func @transform_0(%arg0: i32, %arg1: i32, %arg2: i32) -> (i32, i32, i32) {
    %c1_i32 = arith.constant 1 : i32
    %0 = arith.muli %arg0, %c1_i32 : i32
    %1 = arith.addi %0, %arg2 : i32
    %c0_i32 = arith.constant 0 : i32
    %2 = arith.minsi %1, %c0_i32 : i32
    %c0_i32_0 = arith.constant 0 : i32
    %c0_i32_1 = arith.constant 0 : i32
    return %arg1, %c0_i32_0, %2 : i32, i32, i32
  }
  func.func @transform_1(%arg0: i32, %arg1: i32, %arg2: i32) -> (i32, i32, i32) {
    %c1_i32 = arith.constant 1 : i32
    %0 = arith.muli %arg0, %c1_i32 : i32
    %1 = arith.addi %0, %arg2 : i32
    %c0_i32 = arith.constant 0 : i32
    %2 = arith.minsi %1, %c0_i32 : i32
    %c0_i32_0 = arith.constant 0 : i32
    %c0_i32_1 = arith.constant 0 : i32
    return %arg1, %c0_i32_0, %2 : i32, i32, i32
  }
  func.func @transform_2(%arg0: i32, %arg1: i32, %arg2: i32) -> (i32, i32, i32) {
    %c0_i32 = arith.constant 0 : i32
    %c0_i32_0 = arith.constant 0 : i32
    %c0_i32_1 = arith.constant 0 : i32
    return %arg0, %c0_i32, %c0_i32_0 : i32, i32, i32
  }
  func.func @transform_3(%arg0: i32, %arg1: i32, %arg2: i32) -> (i32, i32, i32) {
    %c0_i32 = arith.constant 0 : i32
    %c0_i32_0 = arith.constant 0 : i32
    %c0_i32_1 = arith.constant 0 : i32
    return %arg0, %c0_i32, %c0_i32_0 : i32, i32, i32
  }
  func.func @transform_4(%arg0: i32, %arg1: i32, %arg2: i32) -> (i32, i32, i32) {
    %c0_i32 = arith.constant 0 : i32
    %c0_i32_0 = arith.constant 0 : i32
    %c0_i32_1 = arith.constant 0 : i32
    return %arg0, %c0_i32, %c0_i32_0 : i32, i32, i32
  }
  func.func @transform_5(%arg0: i32, %arg1: i32, %arg2: i32) -> (i32, i32, i32) {
    %c0_i32 = arith.constant 0 : i32
    %c0_i32_0 = arith.constant 0 : i32
    %c0_i32_1 = arith.constant 0 : i32
    return %arg0, %c0_i32, %c0_i32_0 : i32, i32, i32
  }
}

</mosaic_0001>

<bundles_post_ra>
// kernel: tpu_custom_call.1
= control target key start
LH: loop header
LB: loop body
LE: loop exit
PB: predicated region body
PF: predicated region fallthrough
CT: control target
= control target key end

     0   :  { %11 = vsyncpa [#allocation3], 0  ;;  %s1266_s0 = inlined_call_operand.hbm [shape: f32[2,4,256], index: 0, kind: input, shape index: {}]   ;;  %s1267_s1 = inlined_call_operand.hbm [shape: s32[2,1,256], index: 1, kind: input, shape index: {}]   ;;  %s1268_s2 = inlined_call_operand.vmem [shape: f32[1,4,1], index: 2, kind: output, shape index: {0}]   ;;  %s1269_s3 = inlined_call_operand.vmem [shape: f32[1,4,1], index: 3, kind: output, shape index: {1}]   ;;  %s1270_s4 = inlined_call_operand.vmem [shape: f32[1,4,1], index: 4, kind: output, shape index: {2}]   ;;  %s1271_s5 = inlined_call_operand.hbm [shape: f32[1,1,1], index: 5, kind: output, shape index: {3}]  }
   0x1   :  { %13 = vsyncpa [#allocation3 + $0x1], 0 }
   0x2   :  { %14 = vsyncpa [#allocation6], 0 }
   0x3   :  { %16 = vsyncpa [#allocation6 + $0x1], 0 }
   0x4   :  { %17 = vsyncpa [#allocation4], 0  ;;  %s1029_s18 = smov 0   ;;  %s1031_s19 = smov 0  }
   0x5   :  { %s1033_s20 = smov 0   ;;  %s1035_s21 = smov 0  }
   0x6   :  { %s1037_s22 = smov 0   ;;  %s1039_s23 = smov 0  }
   0x7 LB: > { %s739_s24 = sadd.s32 4294967295, %s992_s23   ;;  %s38_s25 = sadd.s32 1, %s988_s22  ;;  %s992_s23 = sphi %s1039_s23, %s23_s23   ;;  %s988_s22 = sphi %s1037_s22, %s1286_s22   ;;  %s984_s21 = sphi %s1035_s21, %s1285_s21   ;;  %s980_s20 = sphi %s1033_s20, %s1284_s20   ;;  %s976_s19 = sphi %s1031_s19, %s1283_s19   ;;  %s972_s18 = sphi %s1029_s18, %s1282_s18  }
   0x8   : > { %p40_p0 = scmp.ge.s32.totalorder %s38_s25, 2  ;;  %s57_s26 = sadd.s32 1, %s980_s20 }
   0x9   : > { %p64_p1 = scmp.ne.s32.totalorder %s980_s20, %s976_s19  ;;  %p65_p2 = scmp.eq.s32.totalorder %s992_s23, 0 }
   0xa   : > { %s1288_s25 = smov (%p40_p0, %s38_s25), 0  ;;  %p70_p4 = scmp.ne.s32.totalorder %s976_s19, %s972_s18 }
   0xb   : > { %p1065_p3 = por %p65_p2, %p64_p1  ;;  %s52_s28 = ssub.s32 %s988_s22, %s1288_s25 }
   0xc   : > { %p71_p5 = scmp.eq.s32.totalorder %s739_s24, 0  ;;  %p55_p6 = scmp.eq.s32.totalorder %s52_s28, 0 }
   0xd   : > { %p781_p8 = scmp.lt.s32.totalorder %s992_s23, 2  ;;  %s1083_s6 = sand.u32 1, %s980_s20  }
   0xe   : > { %p1074_p7 = por %p71_p5, %p70_p4  ;;  %s761_s7 = sshll.u32 %s988_s22, 7 }
   0xf   : > { %s1080_s30 = scalar_select %p55_p6, %s980_s20, %s57_s26  }
  0x10   : > { %s1274_s29 = scalar_select %p1074_p7, 1, 0 }
  0x11   : > { %s742_s8 = sshll.u32 %s1083_s6, 3  ;;  %s1090_s11 = scalar_lea.hbm %s1266_s0, %s761_s7 }
  0x12   : > { %s236_s12 = scalar_lea.vmem [#allocation2], %s742_s8  ;;  %p1094_p9 = pnand %p781_p8, %p1065_p3 }
  0x13   : > { %s249_s13 = sshll.u32 %s236_s12, 4  ;;  %s233_s15 = scalar_lea.sflag [#allocation3], %s1083_s6  ;;  %s1098_s13 = int_to_ptr.vmem [resolvable:$true] %s249_s13 }
  0x14   : > { %s848_s16 = scalar_lea.hbm %s1090_s11, 128  ;;  %p850_p13 = pneg %p1094_p9 }
  0x15   : > { %p849_p12 = scmp.ne.s32.totalorder %s1090_s11, %s848_s16  ;;  %s853_s26 = scalar_lea.hbm %s1266_s0, 256 }
  0x16   : > { %p854_p2 = scmp.lt.u32.totalorder %s1090_s11, %s1266_s0  ;;  %p855_p3 = scmp.lt.u32.totalorder %s853_s26, %s848_s16 }
  0x17   : > { %p851_p0 = pnand %p850_p13, %p849_p12  ;;  %p857_p5 = scmp.lt.u32.totalorder %s848_s16, %s1090_s11 }
  0x18   : > { %p856_p4 = por %p855_p3, %p854_p2 }
  0x19   : > { %p852_p1 = pneg %p851_p0 }
  0x1a   : > { %p858_p6 = por %p857_p5, %p856_p4 }
  0x1c   : > { %p859_p8 = pnand %p858_p6, %p852_p1 }
  0x1e   : > { %862 = shalt.err (!%p859_p8)
}
  0x1f   : > { %s863_s7 = scalar_lea.vmem %s1098_s13, 128  ;;  %s994_s8 = smov [#allocation2]  }
  0x20   : > { %p864_p12 = scmp.ne.s32.totalorder %s1098_s13, %s863_s7  ;;  %s868_s9 = sshll.u32 %s994_s8, 4  ;;  %s869_s9 = int_to_ptr.vmem [resolvable:$false] %s868_s9 }
  0x21   : > { %s870_s10 = scalar_lea.vmem %s869_s9, 256  ;;  %p871_p11 = scmp.lt.s32.totalorder %s1098_s13, %s869_s9 }
  0x22   : > { %p866_p0 = pnand %p864_p12, %p850_p13  ;;  %p872_p2 = scmp.lt.s32.totalorder %s870_s10, %s863_s7 }
  0x24   : > { %p867_p10 = pneg %p866_p0  ;;  %p873_p3 = por %p872_p2, %p871_p11 }
  0x26   : > { %p874_p4 = pnand %p873_p3, %p867_p10 }
  0x28   : > { %877 = shalt.err (!%p874_p4)
}
  0x29   : > { %777 = dma.hbm_to_vmem [thread:$0]  (!%p1094_p9), %s1090_s11, 128, %s1098_s13, %s233_s15  }
  0x2a   : > { %p1276_p1 = scmp.lt.s32.totalorder %s992_s23, 3  ;;  %p1277_p5 = scmp.ge.s32.totalorder %s992_s23, 1 }
  0x2b   : > { %s745_s16 = sshll.u32 %s1083_s6, 1  ;;  %s762_s17 = sshll.u32 %s988_s22, 5 }
  0x2c   : > { %p1132_p6 = pnand %p1277_p5, %p1276_p1  ;;  %s1141_s27 = scalar_lea.hbm %s1267_s1, %s762_s17 }
  0x2d   : > { %s260_s28 = scalar_lea.vmem [#allocation5], %s745_s16  ;;  %s257_s11 = scalar_lea.sflag [#allocation6], %s1083_s6 }
  0x2e   : > { %s1278_s12 = scalar_select %p1132_p6, 1, 0 }
  0x2f   : > { %s273_s7 = sshll.u32 %s260_s28, 4  ;;  %s878_s13 = scalar_lea.hbm %s1141_s27, 32  ;;  %s274_s7 = int_to_ptr.vmem [resolvable:$true] %s273_s7 }
  0x30   : > { %p879_p10 = scmp.ne.s32.totalorder %s1141_s27, %s878_s13  ;;  %s883_s9 = scalar_lea.hbm %s1267_s1, 64 }
  0x31   : > { %p884_p12 = scmp.lt.u32.totalorder %s1141_s27, %s1267_s1  ;;  %p885_p0 = scmp.lt.u32.totalorder %s883_s9, %s878_s13 }
  0x32   : > { %p881_p11 = pnand %p879_p10, %p850_p13  ;;  %p887_p3 = scmp.lt.u32.totalorder %s878_s13, %s1141_s27 }
  0x33   : > { %p886_p2 = por %p885_p0, %p884_p12 }
  0x34   : > { %p882_p8 = pneg %p881_p11 }
  0x35   : > { %p888_p4 = por %p887_p3, %p886_p2 }
  0x37   : > { %p889_p1 = pnand %p888_p4, %p882_p8 }
  0x39   : > { %892 = shalt.err (!%p889_p1)
}
  0x3a   : > { %s893_s6 = scalar_lea.vmem %s274_s7, 32  ;;  %s995_s16 = smov [#allocation5]  }
  0x3b   : > { %p894_p5 = scmp.ne.s32.totalorder %s274_s7, %s893_s6  ;;  %s898_s18 = sshll.u32 %s995_s16, 4  ;;  %s899_s18 = int_to_ptr.vmem [resolvable:$false] %s898_s18 }
  0x3c   : > { %s900_s26 = scalar_lea.vmem %s899_s18, 64  ;;  %p901_p7 = scmp.lt.s32.totalorder %s274_s7, %s899_s18 }
  0x3d   : > { %p896_p10 = pnand %p894_p5, %p850_p13  ;;  %p902_p6 = scmp.lt.s32.totalorder %s900_s26, %s893_s6 }
  0x3f   : > { %p897_p11 = pneg %p896_p10  ;;  %p903_p0 = por %p902_p6, %p901_p7 }
  0x41   : > { %p904_p12 = pnand %p903_p0, %p897_p11 }
  0x43   : > { %907 = shalt.err (!%p904_p12)
}
  0x44   : > { %780 = dma.hbm_to_vmem [thread:$0]  (!%p1094_p9), %s1141_s27, 32, %s274_s7, %s257_s11  }
  0x45   : > { %p1279_p8 = scmp.ne.s32.totalorder %s1278_s12, 0 }
  0x46   : > { %s284_s28 = sand.u32 (!%p1279_p8), 1, %s976_s19   ;;  %p1280_p13 = scmp.ne.s32.totalorder (!%p1279_p8), %s1274_s29, 0 }
  0x47   : > { %282 = sbr.rel (%p1279_p8) target bundleno = 400 (0x190), region = 28  ;;  %s749_s13 = sshll.u32 (!%p1279_p8), %s284_s28, 3 }
  0x48   : > { %s285_s15 = scalar_lea.sflag (!%p1279_p8), [#allocation3], %s284_s28  ;;  %s288_s8 = scalar_lea.vmem (!%p1279_p8), [#allocation2], %s749_s13 }
  0x4e   : > { %959 = dma.done.wait (%p1280_p13), %s285_s15, 128  }
  0x4f   : > { %961 = vsyncadd (%p1280_p13), %s285_s15, 4294967168  ;;  %s750_s9 = sshll.u32 %s284_s28, 1  ;;  %s294_s10 = scalar_lea.sflag [#allocation6], %s284_s28 }
  0x50   : > { %s1170_s14 = scalar_lea.vmem [#allocation5], %s750_s9 }
  0x51   : > { %963 = dma.done.wait (%p1280_p13), %s294_s10, 32  }
  0x52   : > { %965 = vsyncadd (%p1280_p13), %s294_s10, 4294967264  ;;  %p356_p7 = scmp.eq.s32.totalorder %s984_s21, 0 }
  0x53   : > { %vm362_vm0 = vcmask (%p356_p7), 3072   ;;  %vm366_vm1 = vcmask (%p356_p7), 0   ;;  %v996_v0 = vmov (%p356_p7), 0.0  }
  0x54   : > { %361 = sbr.rel (!%p356_p7) target bundleno = 91 (0x5b), region = 40  ;;  %363 = vst.msk [vmem:[%s1268_s2] sm:$0xf] (%p356_p7), %vm362_vm0, %v996_v0  ;;  %364 = vst.msk [vmem:[%s1269_s3] sm:$0xf] (%p356_p7), %vm362_vm0, %v996_v0 }
  0x55   : > { %365 = vst.msk [vmem:[%s1270_s4] sm:$0xf] (%p356_p7), %vm362_vm0, %v996_v0 }
  0x56   : > { %367 = vst.msk [vmem:[#allocation7] sm:$0x1] (%p356_p7), %vm366_vm1, %v996_v0 }
  0x5b PF: > { %v368_v1 = vld [vmem:[%s288_s8] sm:$0xff]  ;;  %vm417_vm2 = vcmask 1043456   ;;  %v391_v20 = vlaneseq  ;;  %v369_v24 = vld [vmem:[%s1170_s14] sm:$0x3]  ;;  %v997_v43 = vmov 0.0   ;;  %vm513_vm5 = vcmask 1040384  }
  0x5c   : > { %v387_v2 = vcombine.high %v368_v1, %v368_v1  ;;  %v418_v3 = vsel %vm417_vm2, %v368_v1, -inf  ;;  %vm535_vm6 = vcmask 3072   ;;  %s998_s12 = smov [#allocation7]   ;;  %vm528_vm7 = vcmask 0   ;;  %p1222_p9 = scmp.eq.s32.totalorder %s739_s24, 1 }
  0x5d   : > { %v419_v4 = vrot.slane %v418_v3, 4  ;;  %v392_v22 = vshrl.u32 %v391_v20, 7  ;;  %s583_s27 = sshll.u32 %s998_s12, 4  ;;  %s584_s27 = int_to_ptr.vmem [resolvable:$true] %s583_s27 }
  0x5e   : > { %v425_v5 = vsel %vm417_vm2, %v387_v2, -inf  ;;  %s908_s17 = scalar_lea.vmem %s584_s27, 16  ;;  %s914_s6 = scalar_lea.vmem %s584_s27, 32 }
  0x5f   : > { %v420_v6 = vmax.f32 %v418_v3, %v419_v4  ;;  %v426_v7 = vrot.slane %v425_v5, 4  ;;  %v393_v23 = vsub.s32 0, %v392_v22  ;;  %v397_v25 = vsub.s32 1, %v392_v22  ;;  %p909_p6 = scmp.ne.s32.totalorder %s584_s27, %s908_s17  ;;  %p915_p4 = scmp.lt.s32.totalorder %s584_s27, %s584_s27 }
  0x60   : > { %p916_p1 = scmp.lt.s32.totalorder %s914_s6, %s908_s17 }
  0x61   : > { %v421_v8 = vrot.slane %v420_v6, 2  ;;  %v427_v9 = vmax.f32 %v425_v5, %v426_v7  ;;  %v394_v27 = vrot.slane %v369_v24, %v393_v23  ;;  %v398_v31 = vrot.slane %v369_v24, %v397_v25  ;;  %p910_p2 = pnand %p909_p6, %p1222_p9 }
  0x62   : > { %p917_p5 = por %p916_p1, %p915_p4 }
  0x63   : > { %v422_v10 = vmax.f32 %v420_v6, %v421_v8  ;;  %v428_v11 = vrot.slane %v427_v9, 2  ;;  %v406_v35 = vrot.slane %v394_v27, %v393_v23  ;;  %v410_v38 = vrot.slane %v398_v31, %v393_v23  ;;  %p911_p3 = pneg %p910_p2 }
  0x65   : > { %v423_v12 = vrot.slane %v422_v10, 1  ;;  %v429_v13 = vmax.f32 %v427_v9, %v428_v11  ;;  %vm411_vm3 = vcmp.eq.s32.totalorder %v392_v22, %v406_v35  ;;  %vm412_vm4 = vcmp.eq.s32.totalorder %v392_v22, %v410_v38  ;;  %p918_p10 = pnand %p917_p5, %p911_p3 }
  0x66   : > { %v752_v44 = vsel %vm411_vm3, 1.0, %v997_v43  ;;  %v753_v48 = vsel %vm412_vm4, 1.0, %v997_v43 }
  0x67   : > { %v424_v14 = vmax.f32 %v422_v10, %v423_v12  ;;  %v430_v15 = vrot.slane %v429_v13, 1  ;;  %v546_v0 = vsel %vm417_vm2, %v752_v44, 0.0 }
  0x69   : > { %v431_v16 = vmax.f32 %v429_v13, %v430_v15  ;;  %v432_v17 = vsub.f32 %v368_v1, %v424_v14  ;;  %v547_v1 = vsel %vm417_vm2, %v753_v48, 0.0 }
  0x6a   : > { %v548_v12 = vadd.f32 %v547_v1, %v546_v0 }
  0x6b   : > { %v433_v18 = vsub.f32 %v387_v2, %v431_v16  ;;  %v434_v19 = vmul.f32 1.442695, %v432_v17  ;;  %v466_v47 = vmul.f32 %v752_v44, %v432_v17 }
  0x6d   : > { %836 = vpow2.f32 %v434_v19  ;;  %v436_v21 = vmul.f32 1.442695, %v433_v18  ;;  %v467_v50 = vmul.f32 %v753_v48, %v433_v18  ;;  %v468_v51 = vsel %vm417_vm2, %v466_v47, 0.0 }
  0x6e   : > { %v469_v53 = vrot.slane %v468_v51, 4 }
  0x6f   : > { %838 = vpow2.f32 %v436_v21  ;;  %v475_v52 = vsel %vm417_vm2, %v467_v50, 0.0 }
  0x70   : > { %v476_v54 = vrot.slane %v475_v52, 4  ;;  %v470_v56 = vadd.f32 %v469_v53, %v468_v51  ;;  %v537_v51 = vld [vmem:[%s1269_s3] sm:$0xf] }
  0x72   : > { %v477_v59 = vadd.f32 %v476_v54, %v475_v52  ;;  %v471_v63 = vrot.slane %v470_v56, 2  ;;  %v545_v54 = vld [vmem:[%s1270_s4] sm:$0xf] }
  0x74   : > { %v478_v5 = vrot.slane %v477_v59, 2  ;;  %v472_v9 = vadd.f32 %v471_v63, %v470_v56 }
  0x76   : > { %v479_v13 = vadd.f32 %v478_v5, %v477_v59  ;;  %v473_v16 = vrot.slane %v472_v9, 1  ;;  %v530_v59 = vld [vmem:[%s1268_s2] sm:$0xf] }
  0x77   : > { %v837_v26 = vpop.eup %836 }
  0x78   : > { %v438_v28 = vsel %vm417_vm2, %v837_v26, 0.0  ;;  %v480_v20 = vrot.slane %v479_v13, 1  ;;  %v474_v25 = vadd.f32 %v473_v16, %v472_v9 }
  0x79   : > { %v839_v29 = vpop.eup %838  ;;  %v439_v30 = vrot.slane %v438_v28, 4 }
  0x7a   : > { %v445_v32 = vsel %vm417_vm2, %v839_v29, 0.0 }
  0x7b   : > { %v440_v33 = vadd.f32 %v439_v30, %v438_v28  ;;  %v446_v34 = vrot.slane %v445_v32, 4 }
  0x7d   : > { %v441_v36 = vrot.slane %v440_v33, 2  ;;  %v447_v37 = vadd.f32 %v446_v34, %v445_v32 }
  0x7f   : > { %v442_v39 = vadd.f32 %v441_v36, %v440_v33  ;;  %v448_v40 = vrot.slane %v447_v37, 2 }
  0x81   : > { %v443_v41 = vrot.slane %v442_v39, 1  ;;  %v449_v42 = vadd.f32 %v448_v40, %v447_v37 }
  0x83   : > { %v444_v45 = vadd.f32 %v443_v41, %v442_v39  ;;  %v450_v46 = vrot.slane %v449_v42, 1 }
  0x85   : > { %v451_v49 = vadd.f32 %v450_v46, %v449_v42  ;;  %840 = vrcp.f32 %v444_v45 }
  0x87   : > { %842 = vrcp.f32 %v451_v49 }
  0x88   : > { %844 = vlog2.f32 %v444_v45 }
  0x89   : > { %846 = vlog2.f32 %v451_v49 }
  0x8f   : > { %v841_v55 = vpop.eup %840 }
  0x90   : > { %v456_v57 = vmul.f32 %v841_v55, %v837_v26 }
  0x91   : > { %v843_v58 = vpop.eup %842 }
  0x92   : > { %v457_v60 = vmul.f32 %v843_v58, %v839_v29  ;;  %v458_v61 = vmul.f32 %v752_v44, %v456_v57  ;;  %v538_v62 = vsel %vm417_vm2, %v456_v57, 0.0  ;;  %v845_v19 = vpop.eup %844  ;;  %v481_v29 = vadd.f32 %v480_v20, %v479_v13 }
  0x93   : > { %v847_v23 = vpop.eup %846  ;;  %v461_v24 = vmul.f32 0.6931472, %v845_v19 }
  0x94   : > { %v459_v2 = vmul.f32 %v753_v48, %v457_v60  ;;  %v484_v3 = vsel %vm417_vm2, %v458_v61, 0.0  ;;  %v539_v4 = vsel %vm417_vm2, %v457_v60, 0.0  ;;  %v463_v28 = vmul.f32 0.6931472, %v847_v23 }
  0x95   : > { %v485_v6 = vrot.slane %v484_v3, 4  ;;  %v540_v7 = vadd.f32 %v539_v4, %v538_v62  ;;  %v482_v32 = vsub.f32 %v461_v24, %v474_v25 }
  0x96   : > { %v491_v8 = vsel %vm417_vm2, %v459_v2, 0.0  ;;  %v483_v35 = vsub.f32 %v463_v28, %v481_v29 }
  0x97   : > { %v486_v10 = vadd.f32 %v485_v6, %v484_v3  ;;  %v492_v11 = vrot.slane %v491_v8, 4  ;;  %541 = vadd.xlane.f32.xlu1 %v540_v7  ;;  %v507_v40 = vmul.f32 0.3, %v482_v32  ;;  %v531_v50 = vadd.f32 %v491_v8, %v484_v3  ;;  %v506_v3 = vld [vmem:[#allocation7] sm:$0x1] }
  0x98   : > { %v508_v42 = vmul.f32 0.3, %v483_v35 }
  0x99   : > { %v487_v14 = vrot.slane %v486_v10, 2  ;;  %v493_v15 = vadd.f32 %v492_v11, %v491_v8 }
  0x9b   : > { %v488_v17 = vadd.f32 %v487_v14, %v486_v10  ;;  %v494_v18 = vrot.slane %v493_v15, 2  ;;  %549 = vadd.xlane.f32.xlu1 %v548_v12 }
  0x9d   : > { %v489_v21 = vrot.slane %v488_v17, 1  ;;  %v495_v22 = vadd.f32 %v494_v18, %v493_v15 }
  0x9f   : > { %v490_v26 = vadd.f32 %v489_v21, %v488_v17  ;;  %v496_v27 = vrot.slane %v495_v22, 1 }
  0xa1   : > { %v497_v30 = vadd.f32 %v496_v27, %v495_v22  ;;  %v498_v31 = vsub.f32 1.0, %v490_v26 }
  0xa3   : > { %v499_v33 = vsub.f32 1.0, %v497_v30  ;;  %v500_v34 = vmax.f32 %v498_v31, 0.0 }
  0xa5   : > { %v501_v36 = vmax.f32 %v499_v33, 0.0  ;;  %v502_v37 = vmul.f32 %v500_v34, %v500_v34 }
  0xa7   : > { %v503_v38 = vmul.f32 %v501_v36, %v501_v36  ;;  %v504_v39 = vmul.f32 %v502_v37, %v482_v32 }
  0xa9   : > { %v505_v41 = vmul.f32 %v503_v38, %v483_v35  ;;  %v509_v43 = vmul.f32 0.3, %v504_v39 }
  0xab   : > { %v510_v44 = vmul.f32 0.3, %v505_v41  ;;  %v511_v45 = vadd.f32 %v509_v43, %v507_v40 }
  0xad   : > { %v512_v46 = vadd.f32 %v510_v44, %v508_v42  ;;  %v514_v47 = vsel %vm513_vm5, %v511_v45, 0.0 }
  0xaf   : > { %v515_v48 = vsel %vm513_vm5, %v512_v46, 0.0 }
  0xb0   : > { %v516_v49 = vadd.f32 %v515_v48, %v514_v47 }
  0xb2   : > { %517 = vadd.xlane.f32.xlu0 %v516_v49 }
  0xb6   : > { %532 = vadd.xlane.f32.xlu0 %v531_v50 }
 0x124   : > { %v542_v52 = vpop.xlane.xlu1 %541 }
 0x125   : > { %v543_v53 = vadd.f32 %v542_v52, %v537_v51 }
 0x127   : > { %544 = vst.msk [vmem:[%s1269_s3] sm:$0xf] %vm535_vm6, %v543_v53 }
 0x128   : > { %v550_v55 = vpop.xlane.xlu1 %549 }
 0x129   : > { %v551_v56 = vadd.f32 %v550_v55, %v545_v54 }
 0x12b   : > { %552 = vst.msk [vmem:[%s1270_s4] sm:$0xf] %vm535_vm6, %v551_v56 }
 0x13f   : > { %v518_v57 = vpop.xlane.xlu0 %517 }
 0x140   : > { %v519_v58 = vrot.slane %v518_v57, 4 }
 0x142   : > { %v520_v60 = vadd.f32 %v519_v58, %v518_v57 }
 0x143   : > { %v533_v61 = vpop.xlane.xlu0 %532 }
 0x144   : > { %v521_v62 = vrot.slane %v520_v60, 2  ;;  %v534_v63 = vadd.f32 %v533_v61, %v530_v59 }
 0x146   : > { %v522_v0 = vadd.f32 %v521_v62, %v520_v60  ;;  %536 = vst.msk [vmem:[%s1268_s2] sm:$0xf] %vm535_vm6, %v534_v63 }
 0x148   : > { %v523_v1 = vrot.slane %v522_v0, 1 }
 0x14a   : > { %v524_v2 = vadd.f32 %v523_v1, %v522_v0 }
 0x14c   : > { %764 = vpush %v524_v2 }
 0x17d   : > { %s765_s7 = spop %764 }
 0x17e   : > { %v526_v4 = vstv %s765_s7 }
 0x17f   : > { %v527_v5 = vadd.f32 %v526_v4, %v506_v3 }
 0x181   : > { %529 = vst.msk [vmem:[#allocation7] sm:$0x1] %vm528_vm7, %v527_v5 }
 0x182   : > { %921 = shalt.err (!%p918_p10)
}
 0x183   : > { %s922_s29 = scalar_lea.hbm %s1271_s5, 16 }
 0x184   : > { %p923_p11 = scmp.ne.s32.totalorder %s1271_s5, %s922_s29  ;;  %p928_p8 = scmp.lt.u32.totalorder %s922_s29, %s1271_s5 }
 0x186   : > { %p924_p0 = pnand %p923_p11, %p1222_p9 }
 0x188   : > { %p925_p12 = pneg %p924_p0 }
 0x18a   : > { %p930_p13 = pnand %p928_p8, %p925_p12 }
 0x18c   : > { %933 = shalt.err (!%p930_p13)
}
 0x18d   : > { %771 = dma.vmem_to_hbm [thread:$0]  (%p1222_p9), %s584_s27, 16, %s1271_s5, [#allocation4]  }
 0x18e   : > { %967 = dma.done.wait (%p1222_p9), [#allocation4], 16  }
 0x18f   : > { %969 = vsyncadd (%p1222_p9), [#allocation4], 4294967280 }
 0x190 PF: > { %s23_s23 = sadd.s32 1, %s992_s23   ;;  %s1282_s18 = smov %s976_s19 }
 0x191   : > { %p20_p7 = scmp.ge.s32.totalorder %s23_s23, 4   ;;  %s1283_s19 = smov %s980_s20 }
 0x192   : > { %s1284_s20 = smov %s1080_s30  ;;  %s1285_s21 = smov %s988_s22 }
 0x193   : > { %s1286_s22 = smov %s1288_s25  ;;  %22 = sbr.rel (!%p20_p7) target bundleno = 7 (0x7), region = 119 }
 0x19a   :  { %617 = vsyncpa [#allocation3], 1 }
 0x19b   :  { %619 = vsyncpa [#allocation3 + $0x1], 1 }
 0x19c   :  { %620 = vsyncpa [#allocation6], 1 }
 0x19d   :  { %622 = vsyncpa [#allocation6 + $0x1], 1 }
 0x19e   :  { %623 = vsyncpa [#allocation4], 1 }
 0x19f   :  { %625 = vsyncpa [#allocation4 + $0x1], 1 }

</bundles_post_ra>
